<compile_context>
chip_gen: v7x
topology: tpu7x:2x2x1
jax: 0.10.0
libtpu: 0.0.40
codegen_flags: <defaults>
</compile_context>

<pallas_src>
import math
import functools
import numpy as np
import jax
import jax.numpy as jnp
from jax.experimental import pallas as pl
from jax.experimental.pallas import tpu as pltpu


# ----------------------------------------------------------------------------
# Glue: DGConv U-matrix construction (mirrors the PyTorch module's forward).
# ----------------------------------------------------------------------------
def _kronecker_product(a, b):
    return np.kron(a, b)


def _aggregate(gate, D, I, K, sort=True):
    gate = np.asarray(gate, dtype=np.float64)
    if sort:
        # torch: _, ind = gate.sort(descending=True); gate = gate[:, ind[0, :]]
        # TODO(synk): torch.sort is not stable; tie ordering of the binarized
        # (0/1) gate values may differ from a stable numpy argsort.
        ind = np.argsort(-gate[0], kind="stable")
        gate = gate[:, ind]
    U = [gate[0, i] * D + gate[1, i] * I for i in range(K)]
    while len(U) != 1:
        temp = []
        for i in range(0, len(U) - 1, 2):
            temp.append(_kronecker_product(U[i], U[i + 1]))
        if len(U) % 2 != 0:
            temp.append(U[-1])
        U = temp
    return U[0], gate


def build_U(in_channels, out_channels, gate_org, groups=1, sort=True):
    """Reproduces the U computation of DGConv2d.forward (numpy, tiny)."""
    K = gate_org.shape[0]
    g = (np.sign(gate_org) + 1.0) / 2.0            # binarize gate (0/1)
    gate = np.stack([1.0 - g, g])                  # (2, K)
    D = np.eye(2)
    I = np.ones((2, 2))
    U, _ = _aggregate(gate, D, I, K, sort=sort)
    if out_channels // in_channels >= 2:
        r = int(np.ceil(out_channels / in_channels))
        _I = _kronecker_product(np.eye(in_channels), np.ones((r, 1)))
        U = _I @ U
    elif in_channels // out_channels >= 2:
        r = int(np.ceil(in_channels / out_channels))
        _I = _kronecker_product(np.eye(out_channels), np.ones((1, r)))
        U = U @ _I
    U = U[:out_channels, :in_channels]
    if groups > 1:
        group_mask = _kronecker_product(
            np.ones((out_channels // groups, in_channels // groups)), np.eye(groups))
        U = U * group_mask
    return U.astype(np.float32)


def compute_K(in_channels, out_channels):
    if out_channels // in_channels >= 2:
        return int(np.ceil(math.log2(in_channels)))
    elif in_channels // out_channels >= 2:
        return int(np.ceil(math.log2(out_channels)))
    return int(np.ceil(math.log2(max(in_channels, out_channels))))


# ----------------------------------------------------------------------------
# Pallas kernels
# ----------------------------------------------------------------------------
def weight_mask_kernel(w_ref, u_ref, o_ref):
    # One-time kernel: masked + folded (+ optionally bf16-cast) weight  W * U.
    # Hoisted out of the per-tile conv kernel so the mask multiply runs once
    # and all FLOPs stay inside Pallas kernels.
    o_ref[...] = (w_ref[...] * u_ref[...]).astype(o_ref.dtype)


def dgconv_kernel(x_hbm, w_ref, bias_ref, o_ref, win_buf, sem, acc_ref=None, *,
                  kh, kw, stride, dilation, th, wo, cin, win_h, wq,
                  kfold, kfold_eff, per_tap):
    # x_hbm   : (N, Hpad, W', Cin)  padded (and, if stride>1, W-phase-decimated)
    #           NHWC image, left in HBM (memory_space=pl.ANY).
    # w_ref   : (kfold_eff, Cout_out)  masked folded weight (grid-invariant).
    # bias_ref: (1, Cout_out)          f32 bias.
    # o_ref   : (1, TH*Wo, Cout_out)   output row-tile.
    # win_buf : (2, win_h, W', Cin)    double-buffered input row window.
    # sem     : DMA semaphores (2,)
    # acc_ref : (TH*Wo, Cout_out) f32  accumulator (per-tap path only).
    bi = pl.program_id(0)              # batch element
    t = pl.program_id(1)               # output-row tile within this image
    n_pt = pl.num_programs(1)
    slot = t % 2

    # --- P4: manual double-buffered DMA of the halo'd row window ------------
    def window_copy(t_idx, s):
        row0 = t_idx * (th * stride)
        return pltpu.make_async_copy(
            x_hbm.at[bi, pl.ds(row0, win_h)], win_buf.at[s], sem.at[s])

    @pl.when(t == 0)                   # prime the first window of this image
    def _():
        window_copy(0, 0).start()

    @pl.when(t + 1 < n_pt)             # prefetch the next tile's window
    def _():
        window_copy(t + 1, 1 - slot).start()

    window_copy(t, slot).wait()        # current window ready

    tp = th * wo
    rband = th * stride                # rows per tap band before H-decimation

    def tap(i, j):
        # Kernel-tap window, sliced from the VMEM row window. No strided
        # sublane access: W stride was phase-decimated in the wrapper, H
        # stride is a reshape + static index on the loaded band.
        r0 = i * dilation
        jd = j * dilation
        c0 = jd if stride == 1 else (jd % stride) * wq + jd // stride
        band = win_buf[slot, pl.ds(r0, rband), pl.ds(c0, wo), :]
        if stride > 1:
            band = band.reshape(th, stride, wo, cin)[:, 0]
        return band                    # (TH, Wo, Cin)

    if per_tap:
        # kh*kw unrolled MXU matmuls (K = Cin) accumulating in f32 VMEM.
        for i in range(kh):
            for j in range(kw):
                t2 = tap(i, j).reshape(tp, cin)
                wt = w_ref[pl.ds((i * kw + j) * cin, cin), :]
                contrib = jnp.dot(t2, wt, preferred_element_type=jnp.float32)
                if i == 0 and j == 0:
                    acc_ref[...] = contrib
                else:
                    acc_ref[...] += contrib
        acc = acc_ref[...]
    else:
        # Tiny-Cin path: one folded matmul, Kfold zero-padded to 128 lanes.
        taps = [tap(i, j) for i in range(kh) for j in range(kw)]
        if kfold_eff > kfold:
            taps.append(jnp.zeros((th, wo, kfold_eff - kfold), dtype=taps[0].dtype))
        patches = jnp.concatenate(taps, axis=-1).reshape(tp, kfold_eff)
        acc = jnp.dot(patches, w_ref[...], preferred_element_type=jnp.float32)

    # f32 bias-add (v5e VPU has no bf16), then cast to the output dtype.
    o_ref[0] = (acc + bias_ref[...]).astype(o_ref.dtype)


# ----------------------------------------------------------------------------
# Wrapper
# ----------------------------------------------------------------------------
def _pick_row_tile(ho, wo, target_rows):
    """Output-row tile TH so TP=TH*Wo is sublane(8)-aligned and ~target_rows.

    A remainder tile is allowed: n_pt = ceil(Ho / TH); the extra output rows
    of the last tile come from zero-padded input rows and are dropped in the
    wrapper.
    """
    unit = 8 // math.gcd(wo, 8)                       # TH multiple => TP % 8 == 0
    th = max(unit, (target_rows // max(wo, 1)) // unit * unit)
    th_cap = -(-ho // unit) * unit
    th = min(th, th_cap)
    n_pt = -(-ho // th)
    return th, n_pt


def dgconv2d_forward(x_nchw, weight_oihw, bias, U, stride=1, padding=0,
                     dilation=1, p_tile_rows=512, compute_dtype=None,
                     cout_lane_multiple=128, per_tap_min_cin=32):
    """DGConv2d forward. Takes/returns NCHW (PyTorch semantics).

    compute_dtype: storage dtype for image + masked weight (accumulation is
      always f32). Use jnp.bfloat16 on v6e/v7x for 2x MXU rate and half the
      VMEM footprint.
    cout_lane_multiple: output-channel padding multiple when cout >= 128
      (128 on v5e, 256 on v6e/v7x's 256-wide MXU).
    """
    n, cin, h, w = x_nchw.shape
    cout, _, kh, kw = weight_oihw.shape
    out_dtype = x_nchw.dtype
    if compute_dtype is None:
        compute_dtype = out_dtype

    ho = (h + 2 * padding - dilation * (kh - 1) - 1) // stride + 1
    wo = (w + 2 * padding - dilation * (kw - 1) - 1) // stride + 1
    p = ho * wo
    kfold = kh * kw * cin
    per_tap = cin >= per_tap_min_cin
    kfold_eff = kfold if per_tap else ((kfold + 127) // 128) * 128
    if cout < 128:
        cout_out = cout                                   # full-dim exception
    else:
        m = cout_lane_multiple
        cout_out = ((cout + m - 1) // m) * m

    th, n_pt = _pick_row_tile(ho, wo, p_tile_rows)
    tp = th * wo
    ho_pad = n_pt * th
    win_h = th * stride + (kh - 1) * dilation             # halo'd window rows
    hpad_needed = (n_pt - 1) * th * stride + win_h

    # --- layout glue (no FLOPs): NCHW -> NHWC, spatial zero pad,
    #     and (stride>1 only) W-phase decimation. NO im2col. ------------------
    x_nhwc = jnp.transpose(x_nchw, (0, 2, 3, 1))
    extra_h = max(0, hpad_needed - (h + 2 * padding))
    x_pad = jnp.pad(x_nhwc, ((0, 0), (padding, padding + extra_h),
                             (padding, padding), (0, 0)))
    hpad_eff = h + 2 * padding + extra_h
    wpad = w + 2 * padding
    if stride == 1:
        wq = wpad
        w_eff = wpad
        x_dec = x_pad
    else:
        q0_max = ((kw - 1) * dilation) // stride
        wq = max(-(-wpad // stride), q0_max + wo)
        extra_w = stride * wq - wpad
        x_dec = jnp.pad(x_pad, ((0, 0), (0, 0), (0, extra_w), (0, 0)))
        x_dec = x_dec.reshape(n, hpad_eff, wq, stride, cin)
        x_dec = jnp.transpose(x_dec, (0, 1, 3, 2, 4)).reshape(
            n, hpad_eff, stride * wq, cin)
        w_eff = stride * wq
    x_dec = x_dec.astype(compute_dtype)

    # Folded raw weight (kfold_eff, Cout_out) and matching U^T mask; row order
    # ((i*kw + j)*Cin + ci) matches the in-kernel tap order.
    w_fold = jnp.transpose(weight_oihw, (2, 3, 1, 0)).reshape(kfold, cout)
    u_rep = jnp.tile(jnp.transpose(U, (1, 0)), (kh * kw, 1))
    w_fold = jnp.pad(w_fold, ((0, kfold_eff - kfold), (0, cout_out - cout)))
    u_rep = jnp.pad(u_rep, ((0, kfold_eff - kfold), (0, cout_out - cout)))
    b_pad = jnp.pad(bias.reshape(1, cout).astype(jnp.float32),
                    ((0, 0), (0, cout_out - cout)))

    # --- one-time kernel: masked + folded (+ casted) weight (W*U in Pallas) --
    w_masked = pl.pallas_call(
        weight_mask_kernel,
        out_shape=jax.ShapeDtypeStruct((kfold_eff, cout_out), compute_dtype),
    )(w_fold.astype(jnp.float32), u_rep.astype(jnp.float32))

    kernel = functools.partial(
        dgconv_kernel, kh=kh, kw=kw, stride=stride, dilation=dilation,
        th=th, wo=wo, cin=cin, win_h=win_h, wq=wq,
        kfold=kfold, kfold_eff=kfold_eff, per_tap=per_tap)

    # --- VMEM budget computed from the actual block sizes --------------------
    csize = jnp.dtype(compute_dtype).itemsize
    osize = jnp.dtype(out_dtype).itemsize
    vmem_need = (2 * win_h * w_eff * cin * csize            # window double buffer
                 + kfold_eff * cout_out * csize             # weight (Buffered(1))
                 + cout_out * 4                             # bias
                 + 2 * tp * cout_out * osize                # output (double-buffered)
                 + tp * cout_out * 4                        # f32 acc / result
                 + (0 if per_tap else tp * kfold_eff * csize))
    vmem_limit = int(min(max(int(vmem_need * 1.5) + (4 << 20), 16 << 20), 100 << 20))

    # Advisory cost: true (unpadded) FLOPs and useful bytes only.
    flops = int(2 * n * p * kfold * cout)
    bytes_accessed = int(n * h * w * cin * csize + kfold * cout * csize
                         + cout * 4 + n * p * cout * osize)

    scratch = [pltpu.VMEM((2, win_h, w_eff, cin), compute_dtype),
               pltpu.SemaphoreType.DMA((2,))]
    if per_tap:
        scratch.append(pltpu.VMEM((tp, cout_out), jnp.float32))

    out_flat = pl.pallas_call(
        kernel,
        out_shape=jax.ShapeDtypeStruct((n, ho_pad * wo, cout_out), out_dtype),
        grid_spec=pltpu.PrefetchScalarGridSpec(
            num_scalar_prefetch=0,
            grid=(n, n_pt),
            in_specs=[
                # Image stays in HBM; only halo'd row windows are DMA'd.
                pl.BlockSpec(memory_space=pl.ANY),
                # Grid-invariant blocks: single-buffered.
                pl.BlockSpec((kfold_eff, cout_out), lambda b, t: (0, 0),
                             pipeline_mode=pl.Buffered(1)),
                pl.BlockSpec((1, cout_out), lambda b, t: (0, 0),
                             pipeline_mode=pl.Buffered(1)),
            ],
            out_specs=pl.BlockSpec((1, tp, cout_out), lambda b, t: (b, t, 0)),
            scratch_shapes=scratch,
        ),
        compiler_params=pltpu.CompilerParams(
            # batch axis parallel (megacore), spatial axis sequential (the
            # manual window double-buffer carries DMA state across it).
            dimension_semantics=("parallel", "arbitrary"),
            vmem_limit_bytes=vmem_limit),
        cost_estimate=pl.CostEstimate(flops=flops, transcendentals=0,
                                      bytes_accessed=bytes_accessed),
    )(x_dec, w_masked, b_pad)

    out = out_flat.reshape(n, ho_pad, wo, cout_out)[:, :ho, :, :cout]
    # TODO(synk): a fused consumer would take this NHWC tensor directly; the
    # NCHW transpose below is only to match PyTorch's return layout.
    return jnp.transpose(out, (0, 3, 1, 2))


# ----------------------------------------------------------------------------
# Reference + test harness
# ----------------------------------------------------------------------------
def _reference(x, weight, bias, U, stride, padding, dilation):
    masked_w = weight * U[:, :, None, None]
    ref = jax.lax.conv_general_dilated(
        x, masked_w, window_strides=(stride, stride),
        padding=((padding, padding), (padding, padding)),
        rhs_dilation=(dilation, dilation),
        dimension_numbers=("NCHW", "OIHW", "NCHW"))
    return ref + bias[None, :, None, None]


def _run_case(*, in_channels, out_channels, kernel_size, stride, padding,
              dilation, groups, N, H, W, compute_dtype, p_tile_rows, tol, seed):
    K = compute_K(in_channels, out_channels)
    rng = np.random.RandomState(seed)
    gate_org = (1e-8 * rng.choice([-1.0, 1.0], size=K)).astype(np.float32)
    U = jnp.asarray(build_U(in_channels, out_channels, gate_org,
                            groups=groups, sort=True))
    # TODO(synk): gate.data in-place mutation / U_regularizer are training-time
    # bookkeeping with no effect on the returned tensor; not reproduced.

    key = jax.random.fold_in(jax.random.PRNGKey(0), seed)
    kx, kw_, kb = jax.random.split(key, 3)
    fan_in = in_channels * kernel_size * kernel_size
    bound = 1.0 / math.sqrt(fan_in)
    weight = jax.random.uniform(
        kw_, (out_channels, in_channels, kernel_size, kernel_size),
        jnp.float32, -bound, bound)
    bias = jax.random.uniform(kb, (out_channels,), jnp.float32, -bound, bound)
    x = jax.random.normal(kx, (N, in_channels, H, W), jnp.float32)

    out = dgconv2d_forward(x, weight, bias, U, stride=stride, padding=padding,
                           dilation=dilation, p_tile_rows=p_tile_rows,
                           compute_dtype=compute_dtype)
    out = jax.block_until_ready(out)

    ref = _reference(x, weight, bias, U, stride, padding, dilation)
    ho = (H + 2 * padding - dilation * (kernel_size - 1) - 1) // stride + 1
    wo = (W + 2 * padding - dilation * (kernel_size - 1) - 1) // stride + 1
    assert out.shape == (N, out_channels, ho, wo)
    np.testing.assert_allclose(np.asarray(out), np.asarray(ref),
                               rtol=tol, atol=tol)


if __name__ == "__main__":
    # Main config (small, matches the module defaults): tiny-Cin folded path,
    # unpadded small-Cout output, remainder spatial tile (TH=6 over Ho=16)
    # exercising the double-buffered window DMA across 3 tiles per image.
    _run_case(in_channels=4, out_channels=4, kernel_size=3, stride=1,
              padding=1, dilation=1, groups=1, N=2, H=16, W=16,
              compute_dtype=jnp.float32, p_tile_rows=96, tol=1e-5, seed=0)

    # Per-tap accumulation path (Cin >= 32) with bf16 storage + f32 accumulate.
    _run_case(in_channels=32, out_channels=32, kernel_size=3, stride=1,
              padding=1, dilation=1, groups=1, N=1, H=16, W=16,
              compute_dtype=jnp.bfloat16, p_tile_rows=512, tol=5e-2, seed=1)

    # stride=2 + channel-expanding U (out=2*in): wrapper-side W phase
    # decimation, in-kernel reshape-based H decimation (no strided sublane ds).
    _run_case(in_channels=4, out_channels=8, kernel_size=3, stride=2,
              padding=1, dilation=1, groups=1, N=1, H=16, W=16,
              compute_dtype=jnp.float32, p_tile_rows=512, tol=1e-5, seed=2)

    print("KERNEL_OK")
</pallas_src>

<mosaic_0001>
module attributes {stable_mosaic.version = 11 : i64} {
  func.func @weight_mask_kernel(%arg0: memref<128x4xf32, #tpu.memory_space<vmem>>, %arg1: memref<128x4xf32, #tpu.memory_space<vmem>>, %arg2: memref<128x4xf32, #tpu.memory_space<vmem>>) attributes {dimension_semantics = [], scalar_prefetch = 0 : i64, scratch_operands = 0 : i64, tpu.core_type = #tpu.core_type<tc>} {
    %c0 = arith.constant 0 : index
    %c0_0 = arith.constant 0 : index
    %0 = vector.load %arg0[%c0, %c0_0] : memref<128x4xf32, #tpu.memory_space<vmem>>, vector<128x4xf32>
    %c0_1 = arith.constant 0 : index
    %c0_2 = arith.constant 0 : index
    %1 = vector.load %arg1[%c0_1, %c0_2] : memref<128x4xf32, #tpu.memory_space<vmem>>, vector<128x4xf32>
    %2 = arith.mulf %0, %1 : vector<128x4xf32>
    %c0_3 = arith.constant 0 : index
    %c0_4 = arith.constant 0 : index
    %3 = vector.load %arg2[%c0_3, %c0_4] : memref<128x4xf32, #tpu.memory_space<vmem>>, vector<128x4xf32>
    tpu.vector_store %arg2[%c0_3, %c0_4], %2 {strides = array<i32>} : memref<128x4xf32, #tpu.memory_space<vmem>>, vector<128x4xf32>,
    return
  }
}

</mosaic_0001>

<bundles_post_ra>
// kernel: tpu_custom_call.1
= control target key start
LH: loop header
LB: loop body
LE: loop exit
PB: predicated region body
PF: predicated region fallthrough
CT: control target
= control target key end

     0   :  { %vm59_vm0 = vcmask 31744   ;;  %s255_s0 = inlined_call_operand.vmem [shape: f32[128,4], index: 0, kind: input, shape index: {}]   ;;  %s256_s1 = inlined_call_operand.vmem [shape: f32[128,4], index: 1, kind: input, shape index: {}]   ;;  %s257_s2 = inlined_call_operand.vmem [shape: f32[128,4], index: 2, kind: output, shape index: {}]  }
   0x1   :  { %v11_v0 = vld [vmem:[%s255_s0] sm:$0xff]  ;;  %v12_v2 = vld [vmem:[%s255_s0 + $0x8] sm:$0xff]  ;;  %v13_v5 = vld [vmem:[%s255_s0 + $0x10] sm:$0xff] }
   0x2   :  { %v27_v1 = vld [vmem:[%s256_s1] sm:$0xff]  ;;  %v28_v4 = vld [vmem:[%s256_s1 + $0x8] sm:$0xff]  ;;  %v29_v6 = vld [vmem:[%s256_s1 + $0x10] sm:$0xff] }
   0x3   :  { %v43_v3 = vmul.f32 %v27_v1, %v11_v0  ;;  %v44_v7 = vmul.f32 %v28_v4, %v12_v2  ;;  %v45_v8 = vmul.f32 %v29_v6, %v13_v5  ;;  %v14_v9 = vld [vmem:[%s255_s0 + $0x18] sm:$0xff]  ;;  %v15_v11 = vld [vmem:[%s255_s0 + $0x20] sm:$0xff]  ;;  %v16_v14 = vld [vmem:[%s255_s0 + $0x28] sm:$0xff] }
   0x4   :  { %v30_v10 = vld [vmem:[%s256_s1 + $0x18] sm:$0xff]  ;;  %v31_v13 = vld [vmem:[%s256_s1 + $0x20] sm:$0xff]  ;;  %v32_v15 = vld [vmem:[%s256_s1 + $0x28] sm:$0xff] }
   0x5   :  { %60 = vst.msk [vmem:[%s257_s2] sm:$0xff] %vm59_vm0, %v43_v3  ;;  %v46_v12 = vmul.f32 %v30_v10, %v14_v9  ;;  %61 = vst.msk [vmem:[%s257_s2 + $0x8] sm:$0xff] %vm59_vm0, %v44_v7  ;;  %v47_v16 = vmul.f32 %v31_v13, %v15_v11  ;;  %v48_v17 = vmul.f32 %v32_v15, %v16_v14  ;;  %v17_v18 = vld [vmem:[%s255_s0 + $0x30] sm:$0xff]  ;;  %v18_v20 = vld [vmem:[%s255_s0 + $0x38] sm:$0xff] }
   0x6   :  { %62 = vst.msk [vmem:[%s257_s2 + $0x10] sm:$0xff] %vm59_vm0, %v45_v8  ;;  %v33_v19 = vld [vmem:[%s256_s1 + $0x30] sm:$0xff]  ;;  %v34_v22 = vld [vmem:[%s256_s1 + $0x38] sm:$0xff]  ;;  %v19_v23 = vld [vmem:[%s255_s0 + $0x40] sm:$0xff] }
   0x7   :  { %63 = vst.msk [vmem:[%s257_s2 + $0x18] sm:$0xff] %vm59_vm0, %v46_v12  ;;  %v49_v21 = vmul.f32 %v33_v19, %v17_v18  ;;  %v35_v24 = vld [vmem:[%s256_s1 + $0x40] sm:$0xff]  ;;  %64 = vst.msk [vmem:[%s257_s2 + $0x20] sm:$0xff] %vm59_vm0, %v47_v16  ;;  %v50_v25 = vmul.f32 %v34_v22, %v18_v20  ;;  %v20_v27 = vld [vmem:[%s255_s0 + $0x48] sm:$0xff] }
   0x8   :  { %65 = vst.msk [vmem:[%s257_s2 + $0x28] sm:$0xff] %vm59_vm0, %v48_v17  ;;  %v51_v26 = vmul.f32 %v35_v24, %v19_v23  ;;  %v36_v28 = vld [vmem:[%s256_s1 + $0x48] sm:$0xff]  ;;  %v21_v29 = vld [vmem:[%s255_s0 + $0x50] sm:$0xff]  ;;  %v22_v32 = vld [vmem:[%s255_s0 + $0x58] sm:$0xff] }
   0x9   :  { %66 = vst.msk [vmem:[%s257_s2 + $0x30] sm:$0xff] %vm59_vm0, %v49_v21  ;;  %v52_v30 = vmul.f32 %v36_v28, %v20_v27  ;;  %v37_v31 = vld [vmem:[%s256_s1 + $0x50] sm:$0xff]  ;;  %v38_v33 = vld [vmem:[%s256_s1 + $0x58] sm:$0xff]  ;;  %67 = vst.msk [vmem:[%s257_s2 + $0x38] sm:$0xff] %vm59_vm0, %v50_v25 }
   0xa   :  { %68 = vst.msk [vmem:[%s257_s2 + $0x40] sm:$0xff] %vm59_vm0, %v51_v26  ;;  %v53_v34 = vmul.f32 %v37_v31, %v21_v29  ;;  %v54_v35 = vmul.f32 %v38_v33, %v22_v32  ;;  %v23_v36 = vld [vmem:[%s255_s0 + $0x60] sm:$0xff]  ;;  %v24_v38 = vld [vmem:[%s255_s0 + $0x68] sm:$0xff]  ;;  %v25_v41 = vld [vmem:[%s255_s0 + $0x70] sm:$0xff] }
   0xb   :  { %v39_v37 = vld [vmem:[%s256_s1 + $0x60] sm:$0xff]  ;;  %69 = vst.msk [vmem:[%s257_s2 + $0x48] sm:$0xff] %vm59_vm0, %v52_v30  ;;  %v40_v40 = vld [vmem:[%s256_s1 + $0x68] sm:$0xff]  ;;  %v41_v42 = vld [vmem:[%s256_s1 + $0x70] sm:$0xff] }
   0xc   :  { %v55_v39 = vmul.f32 %v39_v37, %v23_v36  ;;  %70 = vst.msk [vmem:[%s257_s2 + $0x50] sm:$0xff] %vm59_vm0, %v53_v34  ;;  %71 = vst.msk [vmem:[%s257_s2 + $0x58] sm:$0xff] %vm59_vm0, %v54_v35  ;;  %v56_v43 = vmul.f32 %v40_v40, %v24_v38  ;;  %v57_v44 = vmul.f32 %v41_v42, %v25_v41  ;;  %v26_v45 = vld [vmem:[%s255_s0 + $0x78] sm:$0xff] }
   0xd   :  { %v42_v46 = vld [vmem:[%s256_s1 + $0x78] sm:$0xff] }
   0xe   :  { %72 = vst.msk [vmem:[%s257_s2 + $0x60] sm:$0xff] %vm59_vm0, %v55_v39  ;;  %v58_v47 = vmul.f32 %v42_v46, %v26_v45  ;;  %73 = vst.msk [vmem:[%s257_s2 + $0x68] sm:$0xff] %vm59_vm0, %v56_v43 }
   0xf   :  { %74 = vst.msk [vmem:[%s257_s2 + $0x70] sm:$0xff] %vm59_vm0, %v57_v44 }
  0x10   :  { %75 = vst.msk [vmem:[%s257_s2 + $0x78] sm:$0xff] %vm59_vm0, %v58_v47 }

</bundles_post_ra>
